<compile_context>
chip_gen: v6e
topology: v6e:2x2x1
jax: 0.10.0
libtpu: 0.0.40
codegen_flags: <defaults>
</compile_context>

<pallas_src>
import jax
import jax.numpy as jnp
from jax import lax
from jax.experimental import pallas as pl
from jax.experimental.pallas import tpu as pltpu


def jungle_kernel(tok_ref, e_fused_ref, w_hh_ref, b_h_ref,
                  w_out_ref, b_out_ref, out_ref):
    """Embedding gather (fused with W_ih) + Elman recurrence + head, in VMEM.

    tok_ref    : (T, Bt)   int32 time-major token ids for this batch tile
    e_fused_ref: (V, D)    bf16  embed @ W_ih (pre-folded)
    w_hh_ref   : (D, D)    bf16  hidden -> hidden
    b_h_ref    : (1, D)    f32   hidden bias
    w_out_ref  : (D, N)    bf16  head weight (pre-transposed, lane-padded)
    b_out_ref  : (1, N)    f32   head bias (lane-padded)
    out_ref    : (Bt, N)   f32   lane-dense logits (first n_outputs lanes valid)
    """
    T, Bt = tok_ref.shape
    V, D = e_fused_ref.shape

    # ---- in-kernel embedding lookup (W_ih already folded into E_fused) via a
    #      one-hot matmul on the MXU.  Out-of-range token ids map to a zero
    #      embedding row (nn.Embedding would raise instead).
    tok = tok_ref[...]                                               # (T, Bt) int32
    iota_v = lax.broadcasted_iota(jnp.int32, (T, Bt, V), 2)          # (T, Bt, V)
    onehot = (tok[:, :, None] == iota_v).astype(jnp.bfloat16)        # (T, Bt, V)
    onehot = onehot.reshape(T * Bt, V)                               # Bt == 8 -> layout-trivial

    # xwb_all[t*Bt + b, :] = x_{b,t} @ W_ih + b_h  (single MXU op, f32 accumulate)
    xwb_all = jnp.dot(onehot, e_fused_ref[...],
                      preferred_element_type=jnp.float32) + b_h_ref[...]   # (T*Bt, D) f32

    w_hh = w_hh_ref[...]                                             # bf16, hoisted load

    # ---- recurrence: hidden state lives in vregs, loop fully unrolled (T static, small).
    h = jnp.zeros((Bt, D), jnp.float32)
    for t in range(T):
        # aligned sublane-tile slice (Bt % 8 == 0) -> no relayout on the serial chain
        pre = xwb_all[t * Bt:(t + 1) * Bt, :] + jnp.dot(
            h.astype(jnp.bfloat16), w_hh, preferred_element_type=jnp.float32)
        h = jnp.maximum(pre, 0.0)                                    # activation = relu

    # module's explicit activation(final_hidden) is idempotent with the last
    # relu above -> not re-applied.
    out_ref[...] = (jnp.dot(h.astype(jnp.bfloat16), w_out_ref[...],
                            preferred_element_type=jnp.float32)
                    + b_out_ref[...])


def init_params(key, vocab_size, internal_dim, n_outputs):
    k_emb, k_ih, k_hh, k_bh, k_out, k_bout = jax.random.split(key, 6)
    s = 1.0 / jnp.sqrt(jnp.float32(internal_dim))
    return {
        # nn.Embedding(vocab_size, internal_dim): rows ~ N(0, 1)
        "embed": jax.random.normal(k_emb, (vocab_size, internal_dim), jnp.float32),
        # recurrent jungle subnet weights (Elman-style)
        "w_ih": jax.random.uniform(k_ih, (internal_dim, internal_dim), jnp.float32, -s, s),
        "w_hh": jax.random.uniform(k_hh, (internal_dim, internal_dim), jnp.float32, -s, s),
        "b_h":  jax.random.uniform(k_bh, (1, internal_dim), jnp.float32, -s, s),
        # nn.Linear(internal_dim, n_outputs) -> stored transposed as (D, n_out)
        "w_out": jax.random.uniform(k_out, (internal_dim, n_outputs), jnp.float32, -s, s),
        "b_out": jax.random.uniform(k_bout, (1, n_outputs), jnp.float32, -s, s),
    }


def jungle_net_forward(tokens, offsets, params, *, b_tile=8):
    """tokens: (B, T) int32 token ids; offsets: unused (forward() ignores it)."""
    del offsets  # the module's forward() receives offsets but never uses them
    B, T = tokens.shape
    V, D = params["embed"].shape
    n_out = params["w_out"].shape[1]
    n_pad = 128 * pl.cdiv(n_out, 128)                 # lane-dense output width

    # Sublane-alignment requirements (per-step slices must hit (8,128) tiles).
    assert B % 8 == 0, "batch must be a multiple of 8 (sublane tile)"
    b_tile = min(b_tile, B)
    assert b_tile % 8 == 0 and B % b_tile == 0
    nb = B // b_tile

    # ---- one-time fold of W_ih (and keep b_h separate) outside the kernel.
    e_fused = (params["embed"] @ params["w_ih"]).astype(jnp.bfloat16)       # (V, D)
    w_hh_bf = params["w_hh"].astype(jnp.bfloat16)
    b_h = params["b_h"].astype(jnp.float32)
    # Zero-pad the head to a lane-dense width; padded lanes output exactly 0.
    w_out_pad = jnp.zeros((D, n_pad), jnp.bfloat16).at[:, :n_out].set(
        params["w_out"].astype(jnp.bfloat16))
    b_out_pad = jnp.zeros((1, n_pad), jnp.float32).at[:, :n_out].set(params["b_out"])

    # Batch-tiled, time-major token layout: tok3[i, t, b] = tokens[i*b_tile + b, t]
    tok3 = tokens.astype(jnp.int32).reshape(nb, b_tile, T).transpose(0, 2, 1)

    # ---- VMEM budget: resident blocks (double-buffered) + in-kernel intermediates.
    v_lanes = 128 * pl.cdiv(V, 128)
    d_lanes = 128 * pl.cdiv(D, 128)
    resident = 2 * (T * b_tile * 4            # token block
                    + V * d_lanes * 2         # E_fused (bf16)
                    + D * d_lanes * 2         # W_hh (bf16)
                    + 8 * d_lanes * 4         # b_h (sublane-padded)
                    + D * n_pad * 2           # W_out (bf16)
                    + 8 * n_pad * 4           # b_out
                    + b_tile * n_pad * 4)     # output block
    scratch = 4 * (T * b_tile * v_lanes * 2   # one-hot (bf16)
                   + T * b_tile * d_lanes * 4)  # xwb_all (f32)
    vmem_limit = int(min(max(resident + scratch + (4 << 20), 32 << 20), 64 << 20))

    flops = 2 * T * B * V * D + 2 * T * B * D * D + 2 * B * D * n_pad
    bytes_accessed = (B * T * 4 + V * D * 2 + D * D * 2 + D * 4
                      + D * n_pad * 2 + n_pad * 4 + B * n_pad * 4)

    out_pad = pl.pallas_call(
        jungle_kernel,
        out_shape=jax.ShapeDtypeStruct((B, n_pad), jnp.float32),
        grid=(nb,),
        in_specs=[
            # per-tile time-major tokens (leading block dim squeezed away)
            pl.BlockSpec((None, T, b_tile), lambda i: (i, 0, 0)),
            # weights/bias stay resident (constant block index across the grid)
            pl.BlockSpec((V, D), lambda i: (0, 0)),
            pl.BlockSpec((D, D), lambda i: (0, 0)),
            pl.BlockSpec((1, D), lambda i: (0, 0)),
            pl.BlockSpec((D, n_pad), lambda i: (0, 0)),
            pl.BlockSpec((1, n_pad), lambda i: (0, 0)),
        ],
        out_specs=pl.BlockSpec((b_tile, n_pad), lambda i: (i, 0)),
        compiler_params=pltpu.CompilerParams(
            dimension_semantics=("parallel",),      # batch tiles across cores (v7x)
            vmem_limit_bytes=vmem_limit),
        cost_estimate=pl.CostEstimate(flops=flops, transcendentals=0,
                                      bytes_accessed=bytes_accessed),
    )(tok3, e_fused, w_hh_bf, b_h, w_out_pad, b_out_pad)
    return out_pad[:, :n_out]


def _reference_forward(tokens, params):
    """Pure-JAX f32 reference of the same (Elman-RNN) semantics."""
    emb = jnp.take(params["embed"], tokens, axis=0)        # (B, T, D)
    B, T, D = emb.shape
    h = jnp.zeros((B, D), jnp.float32)
    for t in range(T):
        h = jnp.maximum(emb[:, t, :] @ params["w_ih"] + h @ params["w_hh"]
                        + params["b_h"], 0.0)
    h = jnp.maximum(h, 0.0)                                # module's explicit activation
    return h @ params["w_out"] + params["b_out"]


if __name__ == "__main__":
    # Small shapes consistent with the module's forward.
    batch, max_len, vocab_size, internal_dim, n_outputs = 8, 8, 50, 32, 4

    key = jax.random.PRNGKey(0)
    k_params, k_tok = jax.random.split(key)

    params = init_params(k_params, vocab_size, internal_dim, n_outputs)
    tokens = jax.random.randint(k_tok, (batch, max_len), 0, vocab_size, jnp.int32)
    offsets = jnp.arange(batch, dtype=jnp.int32) * max_len  # unused by forward

    fwd = jax.jit(jungle_net_forward)
    out = fwd(tokens, offsets, params)
    jax.block_until_ready(out)
    assert out.shape == (batch, n_outputs)

    ref = _reference_forward(tokens, params)
    # Kernel uses bf16 MXU operands with f32 accumulation -> slightly looser
    # tolerance than the f32-everywhere reference.
    assert jnp.allclose(out, ref, rtol=5e-2, atol=5e-2), "kernel/reference mismatch"

    print("KERNEL_OK")
</pallas_src>

<mosaic_0001>
module attributes {stable_mosaic.version = 11 : i64} {
  func.func @jungle_kernel(%arg0: i32, %arg1: memref<1x8x8xi32, #tpu.memory_space<vmem>>, %arg2: memref<50x32xbf16, #tpu.memory_space<vmem>>, %arg3: memref<32x32xbf16, #tpu.memory_space<vmem>>, %arg4: memref<1x32xf32, #tpu.memory_space<vmem>>, %arg5: memref<32x128xbf16, #tpu.memory_space<vmem>>, %arg6: memref<1x128xf32, #tpu.memory_space<vmem>>, %arg7: memref<8x128xf32, #tpu.memory_space<vmem>>) attributes {dimension_semantics = [#tpu.dimension_semantics<parallel>], iteration_bounds = array<i64: 1>, scalar_prefetch = 0 : i64, scratch_operands = 0 : i64, tpu.core_type = #tpu.core_type<tc>, window_params = [{transform_indices = @transform_0, window_bounds = array<i64: 1, 8, 8>}, {pipeline_mode = #tpu.pipeline_mode<synchronous>, transform_indices = @transform_1, window_bounds = array<i64: 50, 32>}, {pipeline_mode = #tpu.pipeline_mode<synchronous>, transform_indices = @transform_2, window_bounds = array<i64: 32, 32>}, {pipeline_mode = #tpu.pipeline_mode<synchronous>, transform_indices = @transform_3, window_bounds = array<i64: 1, 32>}, {pipeline_mode = #tpu.pipeline_mode<synchronous>, transform_indices = @transform_4, window_bounds = array<i64: 32, 128>}, {pipeline_mode = #tpu.pipeline_mode<synchronous>, transform_indices = @transform_5, window_bounds = array<i64: 1, 128>}, {transform_indices = @transform_6, window_bounds = array<i64: 8, 128>}]} {
    %c0 = arith.constant 0 : index
    %c0_0 = arith.constant 0 : index
    %c0_1 = arith.constant 0 : index
    %0 = vector.load %arg1[%c0, %c0_0, %c0_1] : memref<1x8x8xi32, #tpu.memory_space<vmem>>, vector<1x8x8xi32>
    %1 = vector.shape_cast %0 : vector<1x8x8xi32> to vector<8x8xi32>
    %2 = tpu.iota {dimensions = array<i32: 2>} : vector<8x8x50xi32>
    %3 = vector.shape_cast %1 : vector<8x8xi32> to vector<8x8x1xi32>
    %4 = vector.broadcast %3 : vector<8x8x1xi32> to vector<8x8x50xi32>
    %5 = arith.cmpi eq, %4, %2 : vector<8x8x50xi32>
    %6 = arith.extui %5 : vector<8x8x50xi1> to vector<8x8x50xi32>
    %7 = arith.sitofp %6 : vector<8x8x50xi32> to vector<8x8x50xf32>
    %8 = arith.truncf %7 : vector<8x8x50xf32> to vector<8x8x50xbf16>
    %9 = vector.shape_cast %8 : vector<8x8x50xbf16> to vector<64x50xbf16>
    %c0_2 = arith.constant 0 : index
    %c0_3 = arith.constant 0 : index
    %10 = vector.load %arg2[%c0_2, %c0_3] : memref<50x32xbf16, #tpu.memory_space<vmem>>, vector<50x32xbf16>
    %cst = arith.constant dense<0.000000e+00> : vector<64x32xf32>
    %11 = tpu.matmul %9, %10, %cst {dimension_numbers = #tpu.dot_dimension_numbers<[1], [0], [0], [1], [0, 0, 1, 1], [], []>} : vector<64x50xbf16>, vector<50x32xbf16>, vector<64x32xf32> -> vector<64x32xf32>
    %c0_4 = arith.constant 0 : index
    %c0_5 = arith.constant 0 : index
    %12 = vector.load %arg4[%c0_4, %c0_5] : memref<1x32xf32, #tpu.memory_space<vmem>>, vector<1x32xf32>
    %13 = vector.broadcast %12 : vector<1x32xf32> to vector<64x32xf32>
    %14 = arith.addf %11, %13 : vector<64x32xf32>
    %c0_6 = arith.constant 0 : index
    %c0_7 = arith.constant 0 : index
    %15 = vector.load %arg3[%c0_6, %c0_7] : memref<32x32xbf16, #tpu.memory_space<vmem>>, vector<32x32xbf16>
    %cst_8 = arith.constant 0.000000e+00 : f32
    %16 = vector.broadcast %cst_8 : f32 to vector<8x32xf32>
    %17 = vector.extract_strided_slice %14 {offsets = [0, 0], sizes = [8, 32], strides = [1, 1]} : vector<64x32xf32> to vector<8x32xf32>
    %18 = arith.truncf %16 : vector<8x32xf32> to vector<8x32xbf16>
    %cst_9 = arith.constant dense<0.000000e+00> : vector<8x32xf32>
    %19 = tpu.matmul %18, %15, %cst_9 {dimension_numbers = #tpu.dot_dimension_numbers<[1], [0], [0], [1], [0, 0, 1, 1], [], []>} : vector<8x32xbf16>, vector<32x32xbf16>, vector<8x32xf32> -> vector<8x32xf32>
    %20 = arith.addf %17, %19 : vector<8x32xf32>
    %cst_10 = arith.constant 0.000000e+00 : f32
    %21 = vector.broadcast %cst_10 : f32 to vector<8x32xf32>
    %22 = arith.maximumf %20, %21 : vector<8x32xf32>
    %23 = vector.extract_strided_slice %14 {offsets = [8, 0], sizes = [8, 32], strides = [1, 1]} : vector<64x32xf32> to vector<8x32xf32>
    %24 = arith.truncf %22 : vector<8x32xf32> to vector<8x32xbf16>
    %cst_11 = arith.constant dense<0.000000e+00> : vector<8x32xf32>
    %25 = tpu.matmul %24, %15, %cst_11 {dimension_numbers = #tpu.dot_dimension_numbers<[1], [0], [0], [1], [0, 0, 1, 1], [], []>} : vector<8x32xbf16>, vector<32x32xbf16>, vector<8x32xf32> -> vector<8x32xf32>
    %26 = arith.addf %23, %25 : vector<8x32xf32>
    %cst_12 = arith.constant 0.000000e+00 : f32
    %27 = vector.broadcast %cst_12 : f32 to vector<8x32xf32>
    %28 = arith.maximumf %26, %27 : vector<8x32xf32>
    %29 = vector.extract_strided_slice %14 {offsets = [16, 0], sizes = [8, 32], strides = [1, 1]} : vector<64x32xf32> to vector<8x32xf32>
    %30 = arith.truncf %28 : vector<8x32xf32> to vector<8x32xbf16>
    %cst_13 = arith.constant dense<0.000000e+00> : vector<8x32xf32>
    %31 = tpu.matmul %30, %15, %cst_13 {dimension_numbers = #tpu.dot_dimension_numbers<[1], [0], [0], [1], [0, 0, 1, 1], [], []>} : vector<8x32xbf16>, vector<32x32xbf16>, vector<8x32xf32> -> vector<8x32xf32>
    %32 = arith.addf %29, %31 : vector<8x32xf32>
    %cst_14 = arith.constant 0.000000e+00 : f32
    %33 = vector.broadcast %cst_14 : f32 to vector<8x32xf32>
    %34 = arith.maximumf %32, %33 : vector<8x32xf32>
    %35 = vector.extract_strided_slice %14 {offsets = [24, 0], sizes = [8, 32], strides = [1, 1]} : vector<64x32xf32> to vector<8x32xf32>
    %36 = arith.truncf %34 : vector<8x32xf32> to vector<8x32xbf16>
    %cst_15 = arith.constant dense<0.000000e+00> : vector<8x32xf32>
    %37 = tpu.matmul %36, %15, %cst_15 {dimension_numbers = #tpu.dot_dimension_numbers<[1], [0], [0], [1], [0, 0, 1, 1], [], []>} : vector<8x32xbf16>, vector<32x32xbf16>, vector<8x32xf32> -> vector<8x32xf32>
    %38 = arith.addf %35, %37 : vector<8x32xf32>
    %cst_16 = arith.constant 0.000000e+00 : f32
    %39 = vector.broadcast %cst_16 : f32 to vector<8x32xf32>
    %40 = arith.maximumf %38, %39 : vector<8x32xf32>
    %41 = vector.extract_strided_slice %14 {offsets = [32, 0], sizes = [8, 32], strides = [1, 1]} : vector<64x32xf32> to vector<8x32xf32>
    %42 = arith.truncf %40 : vector<8x32xf32> to vector<8x32xbf16>
    %cst_17 = arith.constant dense<0.000000e+00> : vector<8x32xf32>
    %43 = tpu.matmul %42, %15, %cst_17 {dimension_numbers = #tpu.dot_dimension_numbers<[1], [0], [0], [1], [0, 0, 1, 1], [], []>} : vector<8x32xbf16>, vector<32x32xbf16>, vector<8x32xf32> -> vector<8x32xf32>
    %44 = arith.addf %41, %43 : vector<8x32xf32>
    %cst_18 = arith.constant 0.000000e+00 : f32
    %45 = vector.broadcast %cst_18 : f32 to vector<8x32xf32>
    %46 = arith.maximumf %44, %45 : vector<8x32xf32>
    %47 = vector.extract_strided_slice %14 {offsets = [40, 0], sizes = [8, 32], strides = [1, 1]} : vector<64x32xf32> to vector<8x32xf32>
    %48 = arith.truncf %46 : vector<8x32xf32> to vector<8x32xbf16>
    %cst_19 = arith.constant dense<0.000000e+00> : vector<8x32xf32>
    %49 = tpu.matmul %48, %15, %cst_19 {dimension_numbers = #tpu.dot_dimension_numbers<[1], [0], [0], [1], [0, 0, 1, 1], [], []>} : vector<8x32xbf16>, vector<32x32xbf16>, vector<8x32xf32> -> vector<8x32xf32>
    %50 = arith.addf %47, %49 : vector<8x32xf32>
    %cst_20 = arith.constant 0.000000e+00 : f32
    %51 = vector.broadcast %cst_20 : f32 to vector<8x32xf32>
    %52 = arith.maximumf %50, %51 : vector<8x32xf32>
    %53 = vector.extract_strided_slice %14 {offsets = [48, 0], sizes = [8, 32], strides = [1, 1]} : vector<64x32xf32> to vector<8x32xf32>
    %54 = arith.truncf %52 : vector<8x32xf32> to vector<8x32xbf16>
    %cst_21 = arith.constant dense<0.000000e+00> : vector<8x32xf32>
    %55 = tpu.matmul %54, %15, %cst_21 {dimension_numbers = #tpu.dot_dimension_numbers<[1], [0], [0], [1], [0, 0, 1, 1], [], []>} : vector<8x32xbf16>, vector<32x32xbf16>, vector<8x32xf32> -> vector<8x32xf32>
    %56 = arith.addf %53, %55 : vector<8x32xf32>
    %cst_22 = arith.constant 0.000000e+00 : f32
    %57 = vector.broadcast %cst_22 : f32 to vector<8x32xf32>
    %58 = arith.maximumf %56, %57 : vector<8x32xf32>
    %59 = vector.extract_strided_slice %14 {offsets = [56, 0], sizes = [8, 32], strides = [1, 1]} : vector<64x32xf32> to vector<8x32xf32>
    %60 = arith.truncf %58 : vector<8x32xf32> to vector<8x32xbf16>
    %cst_23 = arith.constant dense<0.000000e+00> : vector<8x32xf32>
    %61 = tpu.matmul %60, %15, %cst_23 {dimension_numbers = #tpu.dot_dimension_numbers<[1], [0], [0], [1], [0, 0, 1, 1], [], []>} : vector<8x32xbf16>, vector<32x32xbf16>, vector<8x32xf32> -> vector<8x32xf32>
    %62 = arith.addf %59, %61 : vector<8x32xf32>
    %cst_24 = arith.constant 0.000000e+00 : f32
    %63 = vector.broadcast %cst_24 : f32 to vector<8x32xf32>
    %64 = arith.maximumf %62, %63 : vector<8x32xf32>
    %65 = arith.truncf %64 : vector<8x32xf32> to vector<8x32xbf16>
    %c0_25 = arith.constant 0 : index
    %c0_26 = arith.constant 0 : index
    %66 = vector.load %arg5[%c0_25, %c0_26] : memref<32x128xbf16, #tpu.memory_space<vmem>>, vector<32x128xbf16>
    %cst_27 = arith.constant dense<0.000000e+00> : vector<8x128xf32>
    %67 = tpu.matmul %65, %66, %cst_27 {dimension_numbers = #tpu.dot_dimension_numbers<[1], [0], [0], [1], [0, 0, 1, 1], [], []>} : vector<8x32xbf16>, vector<32x128xbf16>, vector<8x128xf32> -> vector<8x128xf32>
    %c0_28 = arith.constant 0 : index
    %c0_29 = arith.constant 0 : index
    %68 = vector.load %arg6[%c0_28, %c0_29] : memref<1x128xf32, #tpu.memory_space<vmem>>, vector<1x128xf32>
    %69 = vector.broadcast %68 : vector<1x128xf32> to vector<8x128xf32>
    %70 = arith.addf %67, %69 : vector<8x128xf32>
    %c0_30 = arith.constant 0 : index
    %c0_31 = arith.constant 0 : index
    %71 = vector.load %arg7[%c0_30, %c0_31] : memref<8x128xf32, #tpu.memory_space<vmem>>, vector<8x128xf32>
    tpu.vector_store %arg7[%c0_30, %c0_31], %70 {strides = array<i32>} : memref<8x128xf32, #tpu.memory_space<vmem>>, vector<8x128xf32>,
    return
  }
  func.func @transform_0(%arg0: i32) -> (i32, i32, i32) {
    %c0_i32 = arith.constant 0 : i32
    %c0_i32_0 = arith.constant 0 : i32
    %c0_i32_1 = arith.constant 0 : i32
    return %arg0, %c0_i32, %c0_i32_0 : i32, i32, i32
  }
  func.func @transform_1(%arg0: i32) -> (i32, i32) {
    %c0_i32 = arith.constant 0 : i32
    %c0_i32_0 = arith.constant 0 : i32
    %c0_i32_1 = arith.constant 0 : i32
    return %c0_i32, %c0_i32_0 : i32, i32
  }
  func.func @transform_2(%arg0: i32) -> (i32, i32) {
    %c0_i32 = arith.constant 0 : i32
    %c0_i32_0 = arith.constant 0 : i32
    %c0_i32_1 = arith.constant 0 : i32
    return %c0_i32, %c0_i32_0 : i32, i32
  }
  func.func @transform_3(%arg0: i32) -> (i32, i32) {
    %c0_i32 = arith.constant 0 : i32
    %c0_i32_0 = arith.constant 0 : i32
    %c0_i32_1 = arith.constant 0 : i32
    return %c0_i32, %c0_i32_0 : i32, i32
  }
  func.func @transform_4(%arg0: i32) -> (i32, i32) {
    %c0_i32 = arith.constant 0 : i32
    %c0_i32_0 = arith.constant 0 : i32
    %c0_i32_1 = arith.constant 0 : i32
    return %c0_i32, %c0_i32_0 : i32, i32
  }
  func.func @transform_5(%arg0: i32) -> (i32, i32) {
    %c0_i32 = arith.constant 0 : i32
    %c0_i32_0 = arith.constant 0 : i32
    %c0_i32_1 = arith.constant 0 : i32
    return %c0_i32, %c0_i32_0 : i32, i32
  }
  func.func @transform_6(%arg0: i32) -> (i32, i32) {
    %c0_i32 = arith.constant 0 : i32
    %c0_i32_0 = arith.constant 0 : i32
    return %arg0, %c0_i32 : i32, i32
  }
}

</mosaic_0001>

<bundles_post_ra>
// kernel: jungle_net_forward.1
= control target key start
LH: loop header
LB: loop body
LE: loop exit
PB: predicated region body
PF: predicated region fallthrough
CT: control target
= control target key end

     0   :  { %v25_v0 = vlaneseq  ;;  %vm183_vm0 = vcmask 1040384   ;;  %v881_v2 = vmov 0.0   ;;  %vm882_vm1 = vmmov 0   ;;  %s1071_s0 = inlined_call_operand.vmem [shape: s32[1,8,8], index: 0, kind: input, shape index: {}]   ;;  %s1072_s1 = inlined_call_operand.vmem [shape: bf16[50,32], index: 1, kind: input, shape index: {}]   ;;  %s1073_s2 = inlined_call_operand.vmem [shape: bf16[32,32], index: 2, kind: input, shape index: {}]   ;;  %s1074_s3 = inlined_call_operand.vmem [shape: f32[1,32], index: 3, kind: input, shape index: {}]   ;;  %s1075_s4 = inlined_call_operand.vmem [shape: bf16[32,128], index: 4, kind: input, shape index: {}]   ;;  %s1076_s5 = inlined_call_operand.vmem [shape: f32[1,128], index: 5, kind: input, shape index: {}]   ;;  %s1077_s6 = inlined_call_operand.vmem [shape: f32[8,128], index: 6, kind: output, shape index: {}]  }
   0x1   :  { %v873_v1 = vld [vmem:[%s1072_s1 + $0x18] ss:$0 sps:$4 sm:$0x11]   ;;  %797 = vmatprep.subr.bf16.mxu1 %v881_v2  ;;  %801 = vmatprep.mubr.msk.bf16.mxu1 %vm882_vm1, %v881_v2  ;;  %v874_v4 = vld [vmem:[%s1072_s1 + $0x10] sm:$0xff]   ;;  %v933_v5 = vld [vmem:[%s1071_s0] sm:$0xff]  ;;  %v883_v19 = vmov 0  }
   0x2   :  { %v925_v3 = vshrl.u32 %v25_v0, 7  ;;  %869 = vmatprep.subr.msk.bf16.mxu0 %vm183_vm0, %v873_v1  ;;  %v185_v6 = vsel %vm183_vm0, %v873_v1, 0  ;;  %v942_v11 = vld [vmem:[%s1073_s2 + $0x8] sm:$0xff]   ;;  %v953_v15 = vld [vmem:[%s1073_s2] sm:$0xff]   ;;  %v970_v20 = vand.u32 127, %v25_v0  ;;  %vm170_vm6 = vcmask 408576  }
   0x3   :  { %782 = vmatpush3.bf16.msra.mxu0 %v185_v6  ;;  %v876_v12 = vld [vmem:[%s1072_s1 + $0x8] sm:$0xff]   ;;  %798 = vmatpush3.bf16.msra.mxu1 %v942_v11  ;;  %v878_v18 = vld [vmem:[%s1072_s1] sm:$0xff]   ;;  %vm268_vm7 = vcmask 261120  }
   0x4   :  { %v43_v7 = vsub.s32 2, %v925_v3  ;;  %v29_v8 = vsub.s32 0, %v925_v3  ;;  %v50_v9 = vsub.s32 3, %v925_v3  ;;  %v36_v10 = vsub.s32 1, %v925_v3  ;;  %783 = vmatprep.subr.bf16.mxu0 %v874_v4  ;;  %799 = vmatprep.subr.bf16.mxu1 %v881_v2  ;;  %v989_v36 = vld [vmem:[%s1074_s3] ss:$0 sm:$0xff] }
   0x5   :  { %v64_v42 = vsub.s32 5, %v925_v3  ;;  %v57_v43 = vsub.s32 4, %v925_v3  ;;  %v78_v44 = vsub.s32 7, %v925_v3  ;;  %v71_v45 = vsub.s32 6, %v925_v3 }
   0x6   :  { %v44_v13 = vrot.slane %v933_v5, %v43_v7  ;;  %v30_v14 = vrot.slane %v933_v5, %v29_v8  ;;  %v51_v16 = vrot.slane %v933_v5, %v50_v9  ;;  %v37_v17 = vrot.slane %v933_v5, %v36_v10 }
   0x7   :  { %784 = vmatpush3.bf16.msra.mxu0 %v874_v4  ;;  %800 = vmatpush3.bf16.msra.mxu1 %v953_v15  ;;  %v65_v46 = vrot.slane %v933_v5, %v64_v42  ;;  %v58_v47 = vrot.slane %v933_v5, %v57_v43  ;;  %v79_v48 = vrot.slane %v933_v5, %v78_v44 }
   0x8   :  { %46 = vbcast.lane.b32.xlu1 %v44_v13, 256  ;;  %32 = vbcast.lane.b32.xlu0 %v30_v14, 256  ;;  %v72_v49 = vrot.slane %v933_v5, %v71_v45 }
   0x9   :  { %785 = vmatprep.subr.bf16.mxu0 %v876_v12  ;;  %805 = vmatprep.subr.bf16.mxu1 %v881_v2 }
   0xa   :  { %802 = vmatmul.mubr.bf16.vlgmr.msra.gmra.mxu1 %v883_v19 }
   0xb   :  { %786 = vmatpush3.bf16.msra.mxu0 %v876_v12  ;;  %806 = vmatpush3.bf16.msra.mxu1 %v942_v11 }
   0xc   :  { %53 = vbcast.lane.b32.xlu1 %v51_v16, 256  ;;  %39 = vbcast.lane.b32.xlu0 %v37_v17, 256 }
   0xd   :  { %787 = vmatprep.subr.bf16.mxu0 %v878_v18  ;;  %807 = vmatprep.subr.bf16.mxu1 %v881_v2 }
   0xe   :  { %809 = vmatprep.mubr.msk.bf16.mxu1 %vm882_vm1, %v881_v2 }
   0xf   :  { %788 = vmatpush3.bf16.msra.mxu0 %v878_v18  ;;  %808 = vmatpush3.bf16.msra.mxu1 %v953_v15 }
  0x10   :  { %821 = vmatprep.subr.bf16.mxu0 %v881_v2  ;;  %813 = vmatprep.subr.bf16.mxu1 %v881_v2 }
  0x11   :  { %67 = vbcast.lane.b32.xlu1 %v65_v46, 256  ;;  %60 = vbcast.lane.b32.xlu0 %v58_v47, 256 }
  0x15   :  { %81 = vbcast.lane.b32.xlu1 %v79_v48, 256  ;;  %74 = vbcast.lane.b32.xlu0 %v72_v49, 256 }
  0x7a   :  { %v47_v21 = vpop.permute.xlu1 %46  ;;  %v33_v22 = vpop.permute.xlu0 %32 }
  0x7b   :  { %vm85_vm2 = vcmp.eq.s32.totalorder %v47_v21, %v970_v20  ;;  %vm83_vm3 = vcmp.eq.s32.totalorder %v33_v22, %v970_v20 }
  0x7c   :  { %v710_v25 = vsel %vm85_vm2, 1.0, %v881_v2  ;;  %v708_v26 = vsel %vm83_vm3, 1.0, %v881_v2 }
  0x7e   :  { %v54_v23 = vpop.permute.xlu1 %53  ;;  %v40_v24 = vpop.permute.xlu0 %39 }
  0x7f   :  { %vm86_vm4 = vcmp.eq.s32.totalorder %v54_v23, %v970_v20  ;;  %vm84_vm5 = vcmp.eq.s32.totalorder %v40_v24, %v970_v20 }
  0x80   :  { %v711_v27 = vsel %vm86_vm4, 1.0, %v881_v2  ;;  %v709_v28 = vsel %vm84_vm5, 1.0, %v881_v2 }
  0x81   :  { %v743_v29 = vpack.c.bf16 %v711_v27, %v710_v25  ;;  %v742_v30 = vpack.c.bf16 %v709_v28, %v708_v26 }
  0x83   :  { %789 = vmatprep.mubr.msk.bf16.mxu0 %vm170_vm6, %v742_v30  ;;  %v68_v52 = vpop.permute.xlu1 %67  ;;  %v61_v53 = vpop.permute.xlu0 %60 }
  0x84   :  { %790 = vmatmul.mubr.msk.bf16.vlgmr.msra.gmra.mxu0 %vm170_vm6, %v743_v29  ;;  %vm88_vm8 = vcmp.eq.s32.totalorder %v68_v52, %v970_v20  ;;  %vm87_vm9 = vcmp.eq.s32.totalorder %v61_v53, %v970_v20  ;;  %v880_v53 = vld [vmem:[%s1075_s4] sm:$0xff]  }
  0x85   :  { %822 = vmatpush3.bf16.msra.mxu0 %v942_v11  ;;  %v713_v55 = vsel %vm88_vm8, 1.0, %v881_v2  ;;  %v712_v56 = vsel %vm87_vm9, 1.0, %v881_v2 }
  0x86   :  { %823 = vmatprep.subr.bf16.mxu0 %v881_v2  ;;  %v744_v58 = vpack.c.bf16 %v713_v55, %v712_v56 }
  0x87   :  { %v82_v60 = vpop.permute.xlu1 %81  ;;  %v75_v61 = vpop.permute.xlu0 %74 }
  0x88   :  { %vm90_vm10 = vcmp.eq.s32.totalorder %v82_v60, %v970_v20  ;;  %vm89_vm11 = vcmp.eq.s32.totalorder %v75_v61, %v970_v20  ;;  %793 = vmatprep.mubr.msk.bf16.mxu0 %vm170_vm6, %v744_v58  ;;  %v738_v61 = vld [vmem:[%s1076_s5] ss:$0 sm:$0xff] }
  0x89   :  { %824 = vmatpush3.bf16.msra.mxu0 %v953_v15  ;;  %v715_v0 = vsel %vm90_vm10, 1.0, %v881_v2  ;;  %v714_v1 = vsel %vm89_vm11, 1.0, %v881_v2 }
  0x8a   :  { %837 = vmatprep.subr.bf16.mxu0 %v881_v2  ;;  %v745_v4 = vpack.c.bf16 %v715_v0, %v714_v1 }
  0x8c   :  { %794 = vmatmul.mubr.msk.bf16.gmra.mxu0 %vm170_vm6, %v745_v4 }
  0x8d   :  { %825 = vmatprep.mubr.msk.bf16.mxu0 %vm882_vm1, %v881_v2 }
  0xca   :  { %v306_v31 = vpop.f32.mrf.mxu1 }
  0xcc   :  { %v803_v32 = vpop.f32.mrf.mxu1 }
  0xce   :  { %v309_v33 = vpop.f32.mrf.mxu1 }
  0xd0   :  { %v804_v34 = vpop.f32.mrf.mxu1 }
 0x144   :  { %v791_v35 = vpop.f32.mrf.mxu0 }
 0x145   :  { %v230_v7 = vadd.f32 %v791_v35, %v989_v36 }
 0x146   :  { %v221_v37 = vpop.f32.mrf.mxu0 }
 0x147   :  { %v222_v38 = vadd.f32 %v989_v36, %v221_v37 }
 0x148   :  { %v792_v50 = vpop.f32.mrf.mxu0 }
 0x149   :  { %v312_v39 = vadd.f32 %v306_v31, %v222_v38  ;;  %v233_v21 = vadd.f32 %v792_v50, %v989_v36 }
 0x14a   :  { %v224_v51 = vpop.f32.mrf.mxu0 }
 0x14b   :  { %v313_v40 = vmax.f32 %v312_v39, 0.0  ;;  %v225_v54 = vadd.f32 %v989_v36, %v224_v51 }
 0x14c   :  { %v795_v17 = vpop.f32.mrf.mxu0 }
 0x14d   :  { %v314_v41 = vpack.c.bf16 %v313_v40, %v313_v40 }
 0x14e   :  { %v237_v18 = vpop.f32.mrf.mxu0 }
 0x14f   :  { %810 = vmatmul.mubr.msk.bf16.vlgmr.msra.gmra.mxu1 %vm268_vm7, %v314_v41  ;;  %v238_v29 = vadd.f32 %v989_v36, %v237_v18 }
 0x150   :  { %814 = vmatpush3.bf16.msra.mxu1 %v942_v11  ;;  %817 = vmatprep.mubr.msk.bf16.mxu1 %vm882_vm1, %v881_v2  ;;  %v796_v19 = vpop.f32.mrf.mxu0 }
 0x151   :  { %815 = vmatprep.subr.bf16.mxu1 %v881_v2 }
 0x152   :  { %v240_v20 = vpop.f32.mrf.mxu0 }
 0x153   :  { %v241_v38 = vadd.f32 %v989_v36, %v240_v20 }
 0x154   :  { %816 = vmatpush3.bf16.msra.mxu1 %v953_v15 }
 0x155   :  { %829 = vmatprep.subr.bf16.mxu1 %v881_v2 }
 0x20f   :  { %v352_v57 = vpop.f32.mrf.mxu1 }
 0x210   :  { %v358_v59 = vadd.f32 %v352_v57, %v225_v54  ;;  %v249_v54 = vadd.f32 %v796_v19, %v989_v36 }
 0x211   :  { %v811_v62 = vpop.f32.mrf.mxu1 }
 0x212   :  { %v359_v63 = vmax.f32 %v358_v59, 0.0 }
 0x213   :  { %v355_v3 = vpop.f32.mrf.mxu1 }
 0x214   :  { %v360_v5 = vpack.c.bf16 %v359_v63, %v359_v63 }
 0x215   :  { %v812_v6 = vpop.f32.mrf.mxu1 }
 0x216   :  { %818 = vmatmul.mubr.msk.bf16.vlgmr.msra.gmra.mxu1 %vm268_vm7, %v360_v5 }
 0x217   :  { %830 = vmatpush3.bf16.msra.mxu1 %v942_v11  ;;  %833 = vmatprep.mubr.msk.bf16.mxu1 %vm882_vm1, %v881_v2 }
 0x218   :  { %831 = vmatprep.subr.bf16.mxu1 %v881_v2 }
 0x21b   :  { %832 = vmatpush3.bf16.msra.mxu1 %v953_v15 }
 0x21c   :  { %845 = vmatprep.subr.bf16.mxu1 %v881_v2 }
 0x2d6   :  { %v398_v8 = vpop.f32.mrf.mxu1 }
 0x2d7   :  { %v404_v9 = vadd.f32 %v398_v8, %v230_v7 }
 0x2d8   :  { %v819_v10 = vpop.f32.mrf.mxu1 }
 0x2d9   :  { %v405_v12 = vmax.f32 %v404_v9, 0.0 }
 0x2da   :  { %v401_v13 = vpop.f32.mrf.mxu1 }
 0x2db   :  { %v406_v14 = vpack.c.bf16 %v405_v12, %v405_v12 }
 0x2dc   :  { %v820_v16 = vpop.f32.mrf.mxu1 }
 0x2dd   :  { %826 = vmatmul.mubr.msk.bf16.vlgmr.msra.gmra.mxu0 %vm268_vm7, %v406_v14 }
 0x2de   :  { %838 = vmatpush3.bf16.msra.mxu0 %v942_v11  ;;  %841 = vmatprep.mubr.msk.bf16.mxu0 %vm882_vm1, %v881_v2 }
 0x2df   :  { %839 = vmatprep.subr.bf16.mxu0 %v881_v2 }
 0x2e2   :  { %840 = vmatpush3.bf16.msra.mxu0 %v953_v15 }
 0x2e3   :  { %853 = vmatprep.subr.bf16.mxu0 %v881_v2 }
 0x39d   :  { %v444_v22 = vpop.f32.mrf.mxu0 }
 0x39e   :  { %v450_v23 = vadd.f32 %v444_v22, %v233_v21 }
 0x39f   :  { %v827_v24 = vpop.f32.mrf.mxu0 }
 0x3a0   :  { %v451_v25 = vmax.f32 %v450_v23, 0.0 }
 0x3a1   :  { %v447_v26 = vpop.f32.mrf.mxu0 }
 0x3a2   :  { %v452_v27 = vpack.c.bf16 %v451_v25, %v451_v25 }
 0x3a3   :  { %v828_v28 = vpop.f32.mrf.mxu0 }
 0x3a4   :  { %834 = vmatmul.mubr.msk.bf16.vlgmr.msra.gmra.mxu1 %vm268_vm7, %v452_v27 }
 0x3a5   :  { %846 = vmatpush3.bf16.msra.mxu1 %v942_v11  ;;  %849 = vmatprep.mubr.msk.bf16.mxu1 %vm882_vm1, %v881_v2 }
 0x3a6   :  { %847 = vmatprep.subr.bf16.mxu1 %v881_v2 }
 0x3a9   :  { %848 = vmatpush3.bf16.msra.mxu1 %v953_v15 }
 0x3aa   :  { %861 = vmatprep.subr.bf16.mxu1 %v881_v2 }
 0x464   :  { %v490_v30 = vpop.f32.mrf.mxu1 }
 0x465   :  { %v496_v31 = vadd.f32 %v490_v30, %v238_v29 }
 0x466   :  { %v835_v32 = vpop.f32.mrf.mxu1 }
 0x467   :  { %v497_v33 = vmax.f32 %v496_v31, 0.0 }
 0x468   :  { %v493_v34 = vpop.f32.mrf.mxu1 }
 0x469   :  { %v498_v35 = vpack.c.bf16 %v497_v33, %v497_v33 }
 0x46a   :  { %v836_v37 = vpop.f32.mrf.mxu1 }
 0x46b   :  { %842 = vmatmul.mubr.msk.bf16.vlgmr.msra.gmra.mxu0 %vm268_vm7, %v498_v35 }
 0x46c   :  { %854 = vmatpush3.bf16.msra.mxu0 %v942_v11  ;;  %857 = vmatprep.mubr.msk.bf16.mxu0 %vm882_vm1, %v881_v2  ;;  %v879_v11 = vld [vmem:[%s1075_s4 + $0x8] sm:$0xff]  }
 0x46d   :  { %855 = vmatprep.subr.bf16.mxu0 %v881_v2 }
 0x470   :  { %856 = vmatpush3.bf16.msra.mxu0 %v953_v15  ;;  %v246_v15 = vadd.f32 %v795_v17, %v989_v36 }
 0x52b   :  { %v536_v39 = vpop.f32.mrf.mxu0 }
 0x52c   :  { %v542_v40 = vadd.f32 %v536_v39, %v241_v38 }
 0x52d   :  { %v843_v41 = vpop.f32.mrf.mxu0 }
 0x52e   :  { %v543_v42 = vmax.f32 %v542_v40, 0.0 }
 0x52f   :  { %v539_v43 = vpop.f32.mrf.mxu0 }
 0x530   :  { %v544_v44 = vpack.c.bf16 %v543_v42, %v543_v42 }
 0x531   :  { %v844_v45 = vpop.f32.mrf.mxu0 }
 0x532   :  { %850 = vmatmul.mubr.msk.bf16.vlgmr.msra.gmra.mxu1 %vm268_vm7, %v544_v44 }
 0x533   :  { %865 = vmatprep.mubr.msk.bf16.mxu1 %vm882_vm1, %v881_v2  ;;  %862 = vmatpush3.bf16.msra.mxu1 %v879_v11 }
 0x534   :  { %863 = vmatprep.subr.bf16.mxu1 %v881_v2 }
 0x537   :  { %864 = vmatpush3.bf16.msra.mxu1 %v880_v53 }
 0x5f2   :  { %v582_v46 = vpop.f32.mrf.mxu1 }
 0x5f3   :  { %v588_v47 = vadd.f32 %v582_v46, %v246_v15 }
 0x5f4   :  { %v851_v48 = vpop.f32.mrf.mxu1 }
 0x5f5   :  { %v589_v49 = vmax.f32 %v588_v47, 0.0 }
 0x5f6   :  { %v585_v50 = vpop.f32.mrf.mxu1 }
 0x5f7   :  { %v590_v51 = vpack.c.bf16 %v589_v49, %v589_v49 }
 0x5f8   :  { %v852_v52 = vpop.f32.mrf.mxu1 }
 0x5f9   :  { %858 = vmatmul.mubr.msk.bf16.vlgmr.msra.gmra.mxu0 %vm268_vm7, %v590_v51 }
 0x6b9   :  { %v628_v55 = vpop.f32.mrf.mxu0 }
 0x6ba   :  { %v634_v2 = vadd.f32 %v628_v55, %v249_v54 }
 0x6bb   :  { %v859_v56 = vpop.f32.mrf.mxu0 }
 0x6bc   :  { %v635_v57 = vmax.f32 %v634_v2, 0.0 }
 0x6bd   :  { %v631_v58 = vpop.f32.mrf.mxu0 }
 0x6be   :  { %v636_v59 = vpack.c.bf16 %v635_v57, %v635_v57 }
 0x6bf   :  { %v860_v60 = vpop.f32.mrf.mxu0 }
 0x6c0   :  { %866 = vmatmul.mubr.msk.bf16.vlgmr.msra.gmra.mxu1 %vm268_vm7, %v636_v59 }
 0x780   :  { %v697_v62 = vpop.f32.mrf.mxu1 }
 0x781   :  { %v698_v63 = vadd.f32 %v738_v61, %v697_v62 }
 0x782   :  { %v867_v0 = vpop.f32.mrf.mxu1 }
 0x783   :  { %703 = vst [vmem:[%s1077_s6] sm:$0xff] %v698_v63 }
 0x784   :  { %v700_v36 = vpop.f32.mrf.mxu1 }
 0x786   :  { %v868_v1 = vpop.f32.mrf.mxu1 }

</bundles_post_ra>
